<compile_context>
chip_gen: v5e
topology: v5e:2x2
jax: 0.10.0
libtpu: 0.0.40
codegen_flags: <defaults>
</compile_context>

<pallas_src>
import functools

import jax
import jax.numpy as jnp
from jax.experimental import pallas as pl
from jax.experimental.pallas import tpu as pltpu


_NEG_PAD = -1e30  # finite "-inf" for padded logit columns (exp() underflows to 0, no NaNs)


def _round_up(v, m):
    return ((v + m - 1) // m) * m


@functools.lru_cache(maxsize=1)
def _vmem_capacity_bytes():
    try:
        return int(pltpu.get_tpu_info().vmem_capacity_bytes)
    except Exception:
        return 64 * 1024 * 1024  # conservative (v7x per-core VMEM)


def _budgets():
    cap = _vmem_capacity_bytes()
    resident_logits_budget = cap // 4              # f32 resident logits block
    vmem_limit = int(min(cap * 3 // 4, 96 << 20))  # scoped-VMEM request
    return resident_logits_budget, vmem_limit


# ---------------------------------------------------------------------------
# Kernel helpers
# ---------------------------------------------------------------------------
def _online_lse_update(logits, m_ref, l_ref):
    """Per-row running max / sum-exp update across output-column tiles."""
    m_prev = m_ref[...]
    m_new = jnp.maximum(m_prev, jnp.max(logits, axis=-1, keepdims=True))
    l_ref[...] = (l_ref[...] * jnp.exp(m_prev - m_new)
                  + jnp.sum(jnp.exp(logits - m_new), axis=-1, keepdims=True))
    m_ref[...] = m_new


def _mlp_hidden(x, w1, b1, wa1, ba1, wb1, bb1, wa2, ba2, wb2, bb2):
    """Linear -> ResLayer -> ResLayer (bf16 MXU matmuls, f32 accumulate/adds)."""
    h = jnp.dot(x, w1, preferred_element_type=jnp.float32) + b1
    t = jnp.maximum(jnp.dot(h.astype(jnp.bfloat16), wa1,
                            preferred_element_type=jnp.float32) + ba1, 0.0)
    t = jnp.maximum(jnp.dot(t.astype(jnp.bfloat16), wb1,
                            preferred_element_type=jnp.float32) + bb1, 0.0)
    h = h + t
    t = jnp.maximum(jnp.dot(h.astype(jnp.bfloat16), wa2,
                            preferred_element_type=jnp.float32) + ba2, 0.0)
    t = jnp.maximum(jnp.dot(t.astype(jnp.bfloat16), wb2,
                            preferred_element_type=jnp.float32) + bb2, 0.0)
    return h + t


# ---------------------------------------------------------------------------
# Pallas kernels
# ---------------------------------------------------------------------------
def mlp_fused_kernel(x_ref, w1_ref, b1_ref, wa1_ref, ba1_ref, wb1_ref, bb1_ref,
                     wa2_ref, ba2_ref, wb2_ref, bb2_ref, wo_ref, bo_ref,
                     out_ref, h_ref, m_ref, l_ref):
    """MLP stack; logits block resident in VMEM; in-kernel log_softmax."""
    j = pl.program_id(0)

    @pl.when(j == 0)
    def _():
        h = _mlp_hidden(x_ref[...], w1_ref[...], b1_ref[...],
                        wa1_ref[...], ba1_ref[...], wb1_ref[...], bb1_ref[...],
                        wa2_ref[...], ba2_ref[...], wb2_ref[...], bb2_ref[...])
        h_ref[...] = h.astype(jnp.bfloat16)
        m_ref[...] = jnp.full(m_ref.shape, -jnp.inf, m_ref.dtype)
        l_ref[...] = jnp.zeros(l_ref.shape, l_ref.dtype)

    logits = jnp.dot(h_ref[...], wo_ref[...],
                     preferred_element_type=jnp.float32) + bo_ref[...]
    tn = logits.shape[-1]
    col = pl.multiple_of(j * tn, 128)
    out_ref[:, pl.ds(col, tn)] = logits
    _online_lse_update(logits, m_ref, l_ref)

    @pl.when(j == pl.num_programs(0) - 1)
    def _():
        out_ref[...] = out_ref[...] - (m_ref[...] + jnp.log(l_ref[...]))


def linear_fused_kernel(x_ref, w_ref, b_ref, out_ref, m_ref, l_ref):
    """Wide Linear; logits block resident in VMEM; in-kernel log_softmax."""
    j = pl.program_id(0)

    @pl.when(j == 0)
    def _():
        m_ref[...] = jnp.full(m_ref.shape, -jnp.inf, m_ref.dtype)
        l_ref[...] = jnp.zeros(l_ref.shape, l_ref.dtype)

    logits = jnp.dot(x_ref[...], w_ref[...],
                     preferred_element_type=jnp.float32) + b_ref[...]
    tn = logits.shape[-1]
    col = pl.multiple_of(j * tn, 128)
    out_ref[:, pl.ds(col, tn)] = logits
    _online_lse_update(logits, m_ref, l_ref)

    @pl.when(j == pl.num_programs(0) - 1)
    def _():
        out_ref[...] = out_ref[...] - (m_ref[...] + jnp.log(l_ref[...]))


def mlp_stream_kernel(x_ref, w1_ref, b1_ref, wa1_ref, ba1_ref, wb1_ref, bb1_ref,
                      wa2_ref, ba2_ref, wb2_ref, bb2_ref, wo_ref, bo_ref,
                      logits_ref, lse_ref, h_ref, m_ref, l_ref):
    """MLP stack, streaming path: bf16 logits tiles + per-split lse.

    Grid = (n_splits, tiles_per_split); the outer axis is 'parallel' so on
    v7x each TensorCore streams its own half of the output columns with its
    own m/l scratch.
    """
    j = pl.program_id(1)

    @pl.when(j == 0)
    def _():
        h = _mlp_hidden(x_ref[...], w1_ref[...], b1_ref[...],
                        wa1_ref[...], ba1_ref[...], wb1_ref[...], bb1_ref[...],
                        wa2_ref[...], ba2_ref[...], wb2_ref[...], bb2_ref[...])
        h_ref[...] = h.astype(jnp.bfloat16)
        m_ref[...] = jnp.full(m_ref.shape, -jnp.inf, m_ref.dtype)
        l_ref[...] = jnp.zeros(l_ref.shape, l_ref.dtype)

    logits = jnp.dot(h_ref[...], wo_ref[...],
                     preferred_element_type=jnp.float32) + bo_ref[...]
    logits_ref[...] = logits.astype(logits_ref.dtype)
    _online_lse_update(logits, m_ref, l_ref)

    @pl.when(j == pl.num_programs(1) - 1)
    def _():
        lse_ref[...] = jnp.broadcast_to(m_ref[...] + jnp.log(l_ref[...]),
                                        lse_ref.shape)


def linear_stream_kernel(x_ref, w_ref, b_ref, logits_ref, lse_ref, m_ref, l_ref):
    """Wide Linear, streaming path: bf16 logits tiles + per-split lse."""
    j = pl.program_id(1)

    @pl.when(j == 0)
    def _():
        m_ref[...] = jnp.full(m_ref.shape, -jnp.inf, m_ref.dtype)
        l_ref[...] = jnp.zeros(l_ref.shape, l_ref.dtype)

    logits = jnp.dot(x_ref[...], w_ref[...],
                     preferred_element_type=jnp.float32) + b_ref[...]
    logits_ref[...] = logits.astype(logits_ref.dtype)
    _online_lse_update(logits, m_ref, l_ref)

    @pl.when(j == pl.num_programs(1) - 1)
    def _():
        lse_ref[...] = jnp.broadcast_to(m_ref[...] + jnp.log(l_ref[...]),
                                        lse_ref.shape)


# ---------------------------------------------------------------------------
# One-time parameter preparation (padding / bf16 cast hoisted out of the call)
# ---------------------------------------------------------------------------
def _prep_out_weight(w, b, max_tile):
    out_dim = w.shape[1]
    tn = min(max_tile, _round_up(out_dim, 128))
    out_pad = _round_up(out_dim, tn)
    w_p = jnp.pad(w, ((0, 0), (0, out_pad - out_dim))).astype(jnp.bfloat16)
    b_p = jnp.pad(b.astype(jnp.float32), ((0, out_pad - out_dim),),
                  constant_values=_NEG_PAD)[None, :]
    return w_p, b_p, out_dim, out_pad, tn


def prepare_mlp(params_tuple, max_tile=2048):
    (w1, b1, wa1, ba1, wb1, bb1, wa2, ba2, wb2, bb2, wo, bo) = params_tuple
    bf = lambda a: a.astype(jnp.bfloat16)
    rw = lambda v: v[None, :].astype(jnp.float32)
    resident = (bf(w1), rw(b1), bf(wa1), rw(ba1), bf(wb1), rw(bb1),
                bf(wa2), rw(ba2), bf(wb2), rw(bb2))
    wo_p, bo_p, out_dim, out_pad, tn = _prep_out_weight(wo, bo, max_tile)
    return dict(resident=resident, wo=wo_p, bo=bo_p, out_dim=out_dim,
                out_pad=out_pad, tn=tn, s_dim=w1.shape[1])


def prepare_linear(w, b, max_tile=2048):
    w_p, b_p, out_dim, out_pad, tn = _prep_out_weight(w, b, max_tile)
    return dict(w=w_p, b=b_p, out_dim=out_dim, out_pad=out_pad, tn=tn,
                in_dim=w.shape[0])


def prepare_params(params, max_tile=2048):
    """One-time weight padding/casting; call once after init / param update."""
    p = dict(params)
    p['term_mlp_prep'] = prepare_mlp(params['term_mlp'], max_tile)
    p['root_mlp_prep'] = prepare_mlp(params['root_mlp'], max_tile)
    p['rule_prep'] = prepare_linear(params['rule_w'], params['rule_b'], max_tile)
    p['rule2_prep'] = prepare_linear(params['rule2_w'], params['rule2_b'], max_tile)
    return p


# ---------------------------------------------------------------------------
# Wrappers
# ---------------------------------------------------------------------------
def _const_spec(a, grid_ndim):
    zeros = (0,) * a.ndim
    if grid_ndim == 1:
        return pl.BlockSpec(a.shape, lambda j: zeros)
    return pl.BlockSpec(a.shape, lambda c, j: zeros)


def _pick_stream_tile(tn0, out_pad, r_pad, logit_bytes=2, tile_budget=8 << 20):
    """Largest 128-multiple tile dividing out_pad with a bounded logits tile."""
    for m in range(tn0, 128, -128):
        if out_pad % m == 0 and r_pad * m * logit_bytes * 2 <= tile_budget:
            return m
    return 128


def run_mlp_logsoftmax(x, prep, *, force_stream=False):
    """Linear -> ResLayer -> ResLayer -> Linear -> log_softmax."""
    rows = x.shape[0]
    out_dim, out_pad, tn0 = prep['out_dim'], prep['out_pad'], prep['tn']
    s_dim = prep['s_dim']
    r_pad = _round_up(rows, 16)  # bf16 packed-sublane tile is (16, 128)
    resident_budget, vmem_limit = _budgets()

    xp = jnp.pad(x, ((0, r_pad - rows), (0, 0))).astype(jnp.bfloat16)
    resident = (xp,) + prep['resident']

    if (not force_stream) and r_pad * out_pad * 4 <= resident_budget:
        # ---- fused/resident path: logits stay in VMEM, normalized in-kernel.
        tn = tn0
        n_tiles = out_pad // tn
        in_specs = [_const_spec(a, 1) for a in resident]
        in_specs += [pl.BlockSpec((s_dim, tn), lambda j: (0, j)),
                     pl.BlockSpec((1, tn), lambda j: (0, j))]
        out = pl.pallas_call(
            mlp_fused_kernel,
            out_shape=jax.ShapeDtypeStruct((r_pad, out_pad), jnp.float32),
            grid=(n_tiles,),
            in_specs=in_specs,
            out_specs=pl.BlockSpec((r_pad, out_pad), lambda j: (0, 0)),
            scratch_shapes=[pltpu.VMEM((r_pad, s_dim), jnp.bfloat16),
                            pltpu.VMEM((r_pad, 1), jnp.float32),
                            pltpu.VMEM((r_pad, 1), jnp.float32)],
            compiler_params=pltpu.CompilerParams(
                dimension_semantics=("arbitrary",),
                vmem_limit_bytes=vmem_limit),
        )(*resident, prep['wo'], prep['bo'])
        return out[:rows, :out_dim]

    # ---- streaming path: bf16 logits tiles, 2-way column split for v7x.
    tn = _pick_stream_tile(tn0, out_pad, r_pad)
    n_tiles = out_pad // tn
    n_splits = 2 if (n_tiles >= 2 and n_tiles % 2 == 0) else 1
    jt = n_tiles // n_splits
    in_specs = [_const_spec(a, 2) for a in resident]
    in_specs += [pl.BlockSpec((s_dim, tn), lambda c, j: (0, c * jt + j)),
                 pl.BlockSpec((1, tn), lambda c, j: (0, c * jt + j))]
    logits, lse = pl.pallas_call(
        mlp_stream_kernel,
        out_shape=(jax.ShapeDtypeStruct((r_pad, out_pad), jnp.bfloat16),
                   jax.ShapeDtypeStruct((r_pad, n_splits * 128), jnp.float32)),
        grid=(n_splits, jt),
        in_specs=in_specs,
        out_specs=(pl.BlockSpec((r_pad, tn), lambda c, j: (0, c * jt + j)),
                   pl.BlockSpec((r_pad, 128), lambda c, j: (0, c))),
        scratch_shapes=[pltpu.VMEM((r_pad, s_dim), jnp.bfloat16),
                        pltpu.VMEM((r_pad, 1), jnp.float32),
                        pltpu.VMEM((r_pad, 1), jnp.float32)],
        compiler_params=pltpu.CompilerParams(
            dimension_semantics=("parallel", "arbitrary"),
            vmem_limit_bytes=vmem_limit),
    )(*resident, prep['wo'], prep['bo'])
    lse_cols = lse.reshape(r_pad, n_splits, 128)[:, :, 0]
    if n_splits == 1:
        lse_full = lse_cols[:, 0:1]
    else:
        lse_full = jnp.logaddexp(lse_cols[:, 0:1], lse_cols[:, 1:2])
    return (logits.astype(jnp.float32) - lse_full)[:rows, :out_dim]


def run_linear_logsoftmax(x, prep, *, force_stream=False):
    """Linear -> log_softmax (rule_mlp / rule_mlp2)."""
    rows, in_dim = x.shape
    out_dim, out_pad, tn0 = prep['out_dim'], prep['out_pad'], prep['tn']
    r_pad = _round_up(rows, 16)
    resident_budget, vmem_limit = _budgets()

    xp = jnp.pad(x, ((0, r_pad - rows), (0, 0))).astype(jnp.bfloat16)

    if (not force_stream) and r_pad * out_pad * 4 <= resident_budget:
        tn = tn0
        n_tiles = out_pad // tn
        out = pl.pallas_call(
            linear_fused_kernel,
            out_shape=jax.ShapeDtypeStruct((r_pad, out_pad), jnp.float32),
            grid=(n_tiles,),
            in_specs=[_const_spec(xp, 1),
                      pl.BlockSpec((in_dim, tn), lambda j: (0, j)),
                      pl.BlockSpec((1, tn), lambda j: (0, j))],
            out_specs=pl.BlockSpec((r_pad, out_pad), lambda j: (0, 0)),
            scratch_shapes=[pltpu.VMEM((r_pad, 1), jnp.float32),
                            pltpu.VMEM((r_pad, 1), jnp.float32)],
            compiler_params=pltpu.CompilerParams(
                dimension_semantics=("arbitrary",),
                vmem_limit_bytes=vmem_limit),
        )(xp, prep['w'], prep['b'])
        return out[:rows, :out_dim]

    tn = _pick_stream_tile(tn0, out_pad, r_pad)
    n_tiles = out_pad // tn
    n_splits = 2 if (n_tiles >= 2 and n_tiles % 2 == 0) else 1
    jt = n_tiles // n_splits
    logits, lse = pl.pallas_call(
        linear_stream_kernel,
        out_shape=(jax.ShapeDtypeStruct((r_pad, out_pad), jnp.bfloat16),
                   jax.ShapeDtypeStruct((r_pad, n_splits * 128), jnp.float32)),
        grid=(n_splits, jt),
        in_specs=[_const_spec(xp, 2),
                  pl.BlockSpec((in_dim, tn), lambda c, j: (0, c * jt + j)),
                  pl.BlockSpec((1, tn), lambda c, j: (0, c * jt + j))],
        out_specs=(pl.BlockSpec((r_pad, tn), lambda c, j: (0, c * jt + j)),
                   pl.BlockSpec((r_pad, 128), lambda c, j: (0, c))),
        scratch_shapes=[pltpu.VMEM((r_pad, 1), jnp.float32),
                        pltpu.VMEM((r_pad, 1), jnp.float32)],
        compiler_params=pltpu.CompilerParams(
            dimension_semantics=("parallel", "arbitrary"),
            vmem_limit_bytes=vmem_limit),
    )(xp, prep['w'], prep['b'])
    lse_cols = lse.reshape(r_pad, n_splits, 128)[:, :, 0]
    if n_splits == 1:
        lse_full = lse_cols[:, 0:1]
    else:
        lse_full = jnp.logaddexp(lse_cols[:, 0:1], lse_cols[:, 1:2])
    return (logits.astype(jnp.float32) - lse_full)[:rows, :out_dim]


# ---------------------------------------------------------------------------
# Parameter init (deterministic, xavier-uniform like the PyTorch _initialize)
# ---------------------------------------------------------------------------
def xavier(key, in_dim, out_dim):
    bound = (6.0 / (in_dim + out_dim)) ** 0.5
    return jax.random.uniform(key, (in_dim, out_dim), jnp.float32, -bound, bound)


def _bias(key, dim, fan_in):
    bnd = 1.0 / (fan_in ** 0.5)
    return jax.random.uniform(key, (dim,), jnp.float32, -bnd, bnd)


def init_mlp(key, in_dim, s_dim, out_dim):
    ks = jax.random.split(key, 12)
    w1 = xavier(ks[0], in_dim, s_dim);  b1 = _bias(ks[1], s_dim, in_dim)
    wa1 = xavier(ks[2], s_dim, s_dim);  ba1 = _bias(ks[3], s_dim, s_dim)
    wb1 = xavier(ks[4], s_dim, s_dim);  bb1 = _bias(ks[5], s_dim, s_dim)
    wa2 = xavier(ks[6], s_dim, s_dim);  ba2 = _bias(ks[7], s_dim, s_dim)
    wb2 = xavier(ks[8], s_dim, s_dim);  bb2 = _bias(ks[9], s_dim, s_dim)
    wo = xavier(ks[10], s_dim, out_dim); bo = _bias(ks[11], out_dim, s_dim)
    return (w1, b1, wa1, ba1, wb1, bb1, wa2, ba2, wb2, bb2, wo, bo)


def init_lstm_dir(key, in_dim, h_dim):
    k1, k2, k3, k4 = jax.random.split(key, 4)
    w_ih = xavier(k1, in_dim, 4 * h_dim)   # gate order: i, f, g, o
    w_hh = xavier(k2, h_dim, 4 * h_dim)
    b_ih = _bias(k3, 4 * h_dim, h_dim)
    b_hh = _bias(k4, 4 * h_dim, h_dim)
    return (w_ih, w_hh, b_ih, b_hh)


def init_params(key, cfg):
    s_dim, z_dim, w_dim, h_dim = cfg['s_dim'], cfg['z_dim'], cfg['w_dim'], cfg['h_dim']
    NT, T, D, V = cfg['NT'], cfg['T'], cfg['D'], cfg['V']
    NT_T = NT + T
    input_dim = s_dim + z_dim
    keys = jax.random.split(key, 12)
    p = {'cfg': cfg}
    p['term_emb'] = xavier(keys[0], T, s_dim)
    p['d_emb'] = xavier(keys[1], D, s_dim)
    p['nonterm_emb'] = xavier(keys[2], NT, s_dim)
    p['root_emb'] = xavier(keys[3], 1, s_dim)
    p['enc_emb'] = xavier(keys[4], V, w_dim)
    p['lstm_fwd'] = init_lstm_dir(keys[5], w_dim, h_dim)
    p['lstm_bwd'] = init_lstm_dir(keys[6], w_dim, h_dim)
    p['enc_out_w'] = xavier(keys[7], 2 * h_dim, 2 * z_dim)
    p['enc_out_b'] = jnp.zeros((2 * z_dim,), jnp.float32)
    p['term_mlp'] = init_mlp(keys[8], input_dim, s_dim, V)
    p['root_mlp'] = init_mlp(keys[9], input_dim, s_dim, NT)
    p['rule_w'] = xavier(keys[10], input_dim, NT_T * NT_T + NT_T * D)
    p['rule_b'] = jnp.zeros((NT_T * NT_T + NT_T * D,), jnp.float32)
    p['rule2_w'] = xavier(keys[11], input_dim, D * NT_T * 4 + NT_T * NT_T)
    p['rule2_b'] = jnp.zeros((D * NT_T * 4 + NT_T * NT_T,), jnp.float32)
    return p


# ---------------------------------------------------------------------------
# Encoder (bi-LSTM + max-pool over valid positions), kept in plain JAX glue.
# TODO(synk): the sequential LSTM recurrence (pack_padded_sequence semantics)
# has no clean Pallas fit; fwd/bwd directions are merged into a single
# lax.scan (stacked (2,b,h) state) with the input projections hoisted out.
# ---------------------------------------------------------------------------
def bilstm_max_encode(x_emb, seq_len, lstm_fwd, lstm_bwd, h_dim):
    b, n, w_dim = x_emb.shape
    t_idx = jnp.arange(n)
    valid = t_idx[None, :] < seq_len[:, None]                       # (b, n)
    rev_idx = jnp.where(valid, seq_len[:, None] - 1 - t_idx[None, :], t_idx[None, :])

    def gather(a):
        return jnp.take_along_axis(a, jnp.broadcast_to(rev_idx[:, :, None], a.shape), axis=1)

    x_rev = gather(x_emb)

    w_ih_f, w_hh_f, b_ih_f, b_hh_f = lstm_fwd
    w_ih_b, w_hh_b, b_ih_b, b_hh_b = lstm_bwd
    # Hoisted input projections (one batched matmul per direction).
    xp_f = (x_emb.reshape(b * n, w_dim) @ w_ih_f + (b_ih_f + b_hh_f)).reshape(b, n, -1)
    xp_b = (x_rev.reshape(b * n, w_dim) @ w_ih_b + (b_ih_b + b_hh_b)).reshape(b, n, -1)
    xp = jnp.stack([xp_f, xp_b], axis=0)                            # (2, b, n, 4h)
    w_hh = jnp.stack([w_hh_f, w_hh_b], axis=0)                      # (2, h, 4h)

    def step(carry, xp_t):                                          # xp_t: (2, b, 4h)
        h, c = carry
        gates = xp_t + jnp.einsum('kbh,khg->kbg', h, w_hh)
        i, f, g, o = jnp.split(gates, 4, axis=-1)
        c = jax.nn.sigmoid(f) * c + jax.nn.sigmoid(i) * jnp.tanh(g)
        h = jax.nn.sigmoid(o) * jnp.tanh(c)
        return (h, c), h

    init = (jnp.zeros((2, b, h_dim), jnp.float32),
            jnp.zeros((2, b, h_dim), jnp.float32))
    _, hs = jax.lax.scan(step, init, jnp.moveaxis(xp, 2, 0))        # (n, 2, b, h)
    hs = jnp.moveaxis(hs, 0, 2)                                     # (2, b, n, h)
    h_fwd = hs[0]
    h_bwd = gather(hs[1])
    h_cat = jnp.concatenate([h_fwd, h_bwd], axis=-1)                # (b, n, 2h)
    h_cat = jnp.where(valid[:, :, None], h_cat, -jnp.inf)           # pad_packed(padding=-inf)
    return jnp.max(h_cat, axis=1)                                   # (b, 2h)


# ---------------------------------------------------------------------------
# Forward pass
# ---------------------------------------------------------------------------
def compound_lcfrs_forward(params, x, seq_len, eps, evaluating=False):
    cfg = params['cfg']
    b, n = x.shape
    s_dim, z_dim, h_dim = cfg['s_dim'], cfg['z_dim'], cfg['h_dim']
    NT, T, D, V = cfg['NT'], cfg['T'], cfg['D'], cfg['V']
    NT_T = NT + T

    # ---- enc(x): embedding -> bi-LSTM -> max over valid positions -> linear
    # TODO(synk): seq_len == 0 would propagate -inf through h_max (PyTorch's
    # pack_padded_sequence errors instead); callers must pass seq_len >= 1.
    x_emb = params['enc_emb'][x]                                    # (b, n, w_dim)
    h_max = bilstm_max_encode(x_emb, seq_len, params['lstm_fwd'], params['lstm_bwd'], h_dim)
    out = h_max @ params['enc_out_w'] + params['enc_out_b']         # (b, 2z)
    mean, lvar = out[:, :z_dim], out[:, z_dim:]

    z = mean
    if not evaluating:
        z = jnp.exp(0.5 * lvar) * eps + mean

    input_dim = s_dim + z_dim

    # ---- roots
    root_in = jnp.concatenate([jnp.broadcast_to(params['root_emb'], (b, s_dim)), z], axis=-1)
    root = run_mlp_logsoftmax(root_in, params['root_mlp_prep'])     # (b, NT)

    # ---- terms
    # TODO(synk): decompose the first Linear over [emb, z] into emb@W_s + z@W_z
    # broadcast-add to avoid materializing the (b*T, input_dim) concat.
    term_in = jnp.concatenate(
        [jnp.broadcast_to(params['term_emb'][None], (b, T, s_dim)),
         jnp.broadcast_to(z[:, None, :], (b, T, z_dim))], axis=-1).reshape(b * T, input_dim)
    term_logp = run_mlp_logsoftmax(term_in, params['term_mlp_prep']).reshape(b, T, V)
    gathered = jnp.take_along_axis(term_logp,
                                   jnp.broadcast_to(x[:, None, :], (b, T, n)), axis=-1)
    unary = jnp.swapaxes(gathered, -1, -2)                          # (b, n, T)

    # ---- rules
    nt_in = jnp.concatenate(
        [jnp.broadcast_to(params['nonterm_emb'][None], (b, NT, s_dim)),
         jnp.broadcast_to(z[:, None, :], (b, NT, z_dim))], axis=-1).reshape(b * NT, input_dim)
    rule_prob = run_linear_logsoftmax(nt_in, params['rule_prep']).reshape(b, NT, -1)
    binary = rule_prob[:, :, :NT_T * NT_T].reshape(b, NT, NT_T, NT_T)
    binary_close = rule_prob[:, :, NT_T * NT_T:].reshape(b, NT, D, NT_T)

    d_in = jnp.concatenate(
        [jnp.broadcast_to(params['d_emb'][None], (b, D, s_dim)),
         jnp.broadcast_to(z[:, None, :], (b, D, z_dim))], axis=-1).reshape(b * D, input_dim)
    rule_prob2 = run_linear_logsoftmax(d_in, params['rule2_prep']).reshape(b, D, -1)
    binary_dc = rule_prob2[:, :, :NT_T * NT_T].reshape(b, D, NT_T, NT_T)
    binary_d = rule_prob2[:, :, NT_T * NT_T:].reshape(b, D, D, NT_T, 4)

    kl = (-0.5 * (lvar - mean ** 2 - jnp.exp(lvar) + 1.0)).sum(1)   # (b,)

    return {'unary': unary, 'root': root, 'binary': binary,
            'binary_closed': binary_close, 'binary_dc': binary_dc,
            'binary_d': binary_d, 'kl': kl}


# ---------------------------------------------------------------------------
# Pure-JAX references (for kernel self-tests; mirror the kernel's bf16 casts)
# ---------------------------------------------------------------------------
def _bf16_dot(a, w):
    return jnp.dot(a.astype(jnp.bfloat16), w.astype(jnp.bfloat16),
                   preferred_element_type=jnp.float32)


def _ref_linear_logsoftmax(x, w, b):
    logits = _bf16_dot(x, w) + b
    return jax.nn.log_softmax(logits, axis=-1)


def _ref_mlp_logsoftmax(x, p):
    (w1, b1, wa1, ba1, wb1, bb1, wa2, ba2, wb2, bb2, wo, bo) = p
    h = _bf16_dot(x, w1) + b1
    t = jnp.maximum(_bf16_dot(h, wa1) + ba1, 0.0)
    t = jnp.maximum(_bf16_dot(t, wb1) + bb1, 0.0)
    h = h + t
    t = jnp.maximum(_bf16_dot(h, wa2) + ba2, 0.0)
    t = jnp.maximum(_bf16_dot(t, wb2) + bb2, 0.0)
    h = h + t
    logits = _bf16_dot(h, wo) + bo
    return jax.nn.log_softmax(logits, axis=-1)


# ---------------------------------------------------------------------------
if __name__ == "__main__":
    # ---- kernel self-tests: exercise the fused (resident, multi-tile) and
    # ---- streaming (bf16 logits, 2-way column split) paths of both kernels.
    k1, k2, k3 = jax.random.split(jax.random.PRNGKey(42), 3)
    rows, in_dim, wide = 40, 48, 1000
    xt = jax.random.normal(k1, (rows, in_dim), jnp.float32) * 0.3
    wt = xavier(k2, in_dim, wide)
    bt = _bias(k3, wide, in_dim)

    prep_lin = prepare_linear(wt, bt, max_tile=256)      # 4 column tiles of 256
    ref_lin = _ref_linear_logsoftmax(xt, wt, bt)
    got_lin_f = run_linear_logsoftmax(xt, prep_lin)
    got_lin_s = run_linear_logsoftmax(xt, prep_lin, force_stream=True)
    assert bool(jnp.allclose(got_lin_f, ref_lin, atol=5e-3))
    assert bool(jnp.allclose(got_lin_s, ref_lin, atol=5e-2))

    mlp_p = init_mlp(jax.random.PRNGKey(7), in_dim, 32, wide)
    prep_m = prepare_mlp(mlp_p, max_tile=256)
    ref_mlp = _ref_mlp_logsoftmax(xt, mlp_p)
    got_mlp_f = run_mlp_logsoftmax(xt, prep_m)
    got_mlp_s = run_mlp_logsoftmax(xt, prep_m, force_stream=True)
    assert bool(jnp.allclose(got_mlp_f, ref_mlp, atol=1e-2))
    assert bool(jnp.allclose(got_mlp_s, ref_mlp, atol=5e-2))

    # ---- end-to-end CompoundLCFRS forward at small shapes
    cfg = dict(NT=4, T=4, D=2, V=64, s_dim=32, z_dim=16, w_dim=16, h_dim=16)
    key = jax.random.PRNGKey(0)
    k_param, k_x, k_eps = jax.random.split(key, 3)

    params = prepare_params(init_params(k_param, cfg))   # one-time weight prep

    b, n = 2, 8
    x = jax.random.randint(k_x, (b, n), 0, cfg['V'])                # word ids
    seq_len = jnp.array([8, 5], dtype=jnp.int32)
    eps = jax.random.normal(k_eps, (b, cfg['z_dim']), jnp.float32)  # reparam noise

    out = compound_lcfrs_forward(params, x, seq_len, eps, evaluating=False)
    out = jax.tree_util.tree_map(jax.block_until_ready, out)

    NT_T = cfg['NT'] + cfg['T']
    assert out['unary'].shape == (b, n, cfg['T'])
    assert out['root'].shape == (b, cfg['NT'])
    assert out['binary'].shape == (b, cfg['NT'], NT_T, NT_T)
    assert out['binary_closed'].shape == (b, cfg['NT'], cfg['D'], NT_T)
    assert out['binary_dc'].shape == (b, cfg['D'], NT_T, NT_T)
    assert out['binary_d'].shape == (b, cfg['D'], cfg['D'], NT_T, 4)
    assert out['kl'].shape == (b,)
    assert all(bool(jnp.isfinite(v).all()) for k, v in out.items())
    # normalization sanity: each log_softmax row sums to ~1 in prob space
    assert bool(jnp.allclose(jnp.exp(out['root']).sum(-1), 1.0, atol=1e-3))

    print("KERNEL_OK")
</pallas_src>

<mosaic_0001>
module attributes {stable_mosaic.version = 11 : i64} {
  func.func @linear_fused_kernel(%arg0: i32, %arg1: memref<48x48xbf16, #tpu.memory_space<vmem>>, %arg2: memref<48x256xbf16, #tpu.memory_space<vmem>>, %arg3: memref<1x256xf32, #tpu.memory_space<vmem>>, %arg4: memref<48x1024xf32, #tpu.memory_space<vmem>>, %arg5: memref<48x1xf32, #tpu.memory_space<vmem>>, %arg6: memref<48x1xf32, #tpu.memory_space<vmem>>) attributes {dimension_semantics = [#tpu.dimension_semantics<arbitrary>], iteration_bounds = array<i64: 4>, scalar_prefetch = 0 : i64, scratch_operands = 2 : i64, tpu.core_type = #tpu.core_type<tc>, window_params = [{pipeline_mode = #tpu.pipeline_mode<synchronous>, transform_indices = @transform_0, window_bounds = array<i64: 48, 48>}, {transform_indices = @transform_1, window_bounds = array<i64: 48, 256>}, {transform_indices = @transform_2, window_bounds = array<i64: 1, 256>}, {pipeline_mode = #tpu.pipeline_mode<synchronous>, transform_indices = @transform_3, window_bounds = array<i64: 48, 1024>}]} {
    %c0_i32 = arith.constant 0 : i32
    %0 = arith.cmpi eq, %arg0, %c0_i32 : i32
    %1 = arith.extui %0 : i1 to i32
    %c0_i32_0 = arith.constant 0 : i32
    %2 = arith.cmpi ne, %1, %c0_i32_0 : i32
    scf.if %2 {
      %cst_18 = arith.constant 0xFF800000 : f32
      %32 = vector.broadcast %cst_18 : f32 to vector<48x1xf32>
      %c0_19 = arith.constant 0 : index
      %c0_20 = arith.constant 0 : index
      %33 = vector.load %arg5[%c0_19, %c0_20] : memref<48x1xf32, #tpu.memory_space<vmem>>, vector<48x1xf32>
      tpu.vector_store %arg5[%c0_19, %c0_20], %32 {strides = array<i32>} : memref<48x1xf32, #tpu.memory_space<vmem>>, vector<48x1xf32>,
      %cst_21 = arith.constant 0.000000e+00 : f32
      %34 = vector.broadcast %cst_21 : f32 to vector<48x1xf32>
      %c0_22 = arith.constant 0 : index
      %c0_23 = arith.constant 0 : index
      %35 = vector.load %arg6[%c0_22, %c0_23] : memref<48x1xf32, #tpu.memory_space<vmem>>, vector<48x1xf32>
      tpu.vector_store %arg6[%c0_22, %c0_23], %34 {strides = array<i32>} : memref<48x1xf32, #tpu.memory_space<vmem>>, vector<48x1xf32>,
    } else {
    }
    %c0 = arith.constant 0 : index
    %c0_1 = arith.constant 0 : index
    %3 = vector.load %arg1[%c0, %c0_1] : memref<48x48xbf16, #tpu.memory_space<vmem>>, vector<48x48xbf16>
    %c0_2 = arith.constant 0 : index
    %c0_3 = arith.constant 0 : index
    %4 = vector.load %arg2[%c0_2, %c0_3] : memref<48x256xbf16, #tpu.memory_space<vmem>>, vector<48x256xbf16>
    %cst = arith.constant dense<0.000000e+00> : vector<48x256xf32>
    %5 = tpu.matmul %3, %4, %cst {dimension_numbers = #tpu.dot_dimension_numbers<[1], [0], [0], [1], [0, 0, 1, 1], [], []>} : vector<48x48xbf16>, vector<48x256xbf16>, vector<48x256xf32> -> vector<48x256xf32>
    %c0_4 = arith.constant 0 : index
    %c0_5 = arith.constant 0 : index
    %6 = vector.load %arg3[%c0_4, %c0_5] : memref<1x256xf32, #tpu.memory_space<vmem>>, vector<1x256xf32>
    %7 = vector.broadcast %6 : vector<1x256xf32> to vector<48x256xf32>
    %8 = arith.addf %5, %7 : vector<48x256xf32>
    %c256_i32 = arith.constant 256 : i32
    %9 = arith.muli %arg0, %c256_i32 : i32
    %10 = tpu.assume_multiple %9, 128 : i32
    %c0_6 = arith.constant 0 : index
    %11 = arith.index_cast %10 : i32 to index
    %12 = vector.load %arg4[%c0_6, %11] : memref<48x1024xf32, #tpu.memory_space<vmem>>, vector<48x256xf32>
    tpu.vector_store %arg4[%c0_6, %11], %8 {strides = array<i32>} : memref<48x1024xf32, #tpu.memory_space<vmem>>, vector<48x256xf32>,
    %c0_7 = arith.constant 0 : index
    %c0_8 = arith.constant 0 : index
    %13 = vector.load %arg5[%c0_7, %c0_8] : memref<48x1xf32, #tpu.memory_space<vmem>>, vector<48x1xf32>
    %cst_9 = arith.constant dense<0xFF800000> : vector<48xf32>
    %14 = vector.multi_reduction <maximumf>, %8, %cst_9 [1] : vector<48x256xf32> to vector<48xf32>
    %15 = vector.shape_cast %14 : vector<48xf32> to vector<48x1xf32>
    %16 = arith.maximumf %13, %15 : vector<48x1xf32>
    %c0_10 = arith.constant 0 : index
    %c0_11 = arith.constant 0 : index
    %17 = vector.load %arg6[%c0_10, %c0_11] : memref<48x1xf32, #tpu.memory_space<vmem>>, vector<48x1xf32>
    %18 = arith.subf %13, %16 : vector<48x1xf32>
    %19 = math.exp %18 : vector<48x1xf32>
    %20 = arith.mulf %17, %19 : vector<48x1xf32>
    %21 = vector.broadcast %16 : vector<48x1xf32> to vector<48x256xf32>
    %22 = arith.subf %8, %21 : vector<48x256xf32>
    %23 = math.exp %22 : vector<48x256xf32>
    %cst_12 = arith.constant dense<0.000000e+00> : vector<48xf32>
    %24 = vector.multi_reduction <add>, %23, %cst_12 [1] : vector<48x256xf32> to vector<48xf32>
    %25 = vector.shape_cast %24 : vector<48xf32> to vector<48x1xf32>
    %26 = arith.addf %20, %25 : vector<48x1xf32>
    %c0_13 = arith.constant 0 : index
    %c0_14 = arith.constant 0 : index
    %27 = vector.load %arg6[%c0_13, %c0_14] : memref<48x1xf32, #tpu.memory_space<vmem>>, vector<48x1xf32>
    tpu.vector_store %arg6[%c0_13, %c0_14], %26 {strides = array<i32>} : memref<48x1xf32, #tpu.memory_space<vmem>>, vector<48x1xf32>,
    %c0_15 = arith.constant 0 : index
    %c0_16 = arith.constant 0 : index
    %28 = vector.load %arg5[%c0_15, %c0_16] : memref<48x1xf32, #tpu.memory_space<vmem>>, vector<48x1xf32>
    tpu.vector_store %arg5[%c0_15, %c0_16], %16 {strides = array<i32>} : memref<48x1xf32, #tpu.memory_space<vmem>>, vector<48x1xf32>,
    %c3_i32 = arith.constant 3 : i32
    %29 = arith.cmpi eq, %arg0, %c3_i32 : i32
    %30 = arith.extui %29 : i1 to i32
    %c0_i32_17 = arith.constant 0 : i32
    %31 = arith.cmpi ne, %30, %c0_i32_17 : i32
    scf.if %31 {
      %c0_18 = arith.constant 0 : index
      %c0_19 = arith.constant 0 : index
      %32 = vector.load %arg4[%c0_18, %c0_19] : memref<48x1024xf32, #tpu.memory_space<vmem>>, vector<48x1024xf32>
      %c0_20 = arith.constant 0 : index
      %c0_21 = arith.constant 0 : index
      %33 = vector.load %arg5[%c0_20, %c0_21] : memref<48x1xf32, #tpu.memory_space<vmem>>, vector<48x1xf32>
      %c0_22 = arith.constant 0 : index
      %c0_23 = arith.constant 0 : index
      %34 = vector.load %arg6[%c0_22, %c0_23] : memref<48x1xf32, #tpu.memory_space<vmem>>, vector<48x1xf32>
      %35 = math.log %34 : vector<48x1xf32>
      %36 = arith.addf %33, %35 : vector<48x1xf32>
      %37 = vector.broadcast %36 : vector<48x1xf32> to vector<48x1024xf32>
      %38 = arith.subf %32, %37 : vector<48x1024xf32>
      %c0_24 = arith.constant 0 : index
      %c0_25 = arith.constant 0 : index
      %39 = vector.load %arg4[%c0_24, %c0_25] : memref<48x1024xf32, #tpu.memory_space<vmem>>, vector<48x1024xf32>
      tpu.vector_store %arg4[%c0_24, %c0_25], %38 {strides = array<i32>} : memref<48x1024xf32, #tpu.memory_space<vmem>>, vector<48x1024xf32>,
    } else {
    }
    return
  }
  func.func @transform_0(%arg0: i32) -> (i32, i32) {
    %c0_i32 = arith.constant 0 : i32
    %c0_i32_0 = arith.constant 0 : i32
    %c0_i32_1 = arith.constant 0 : i32
    return %c0_i32, %c0_i32_0 : i32, i32
  }
  func.func @transform_1(%arg0: i32) -> (i32, i32) {
    %c0_i32 = arith.constant 0 : i32
    %c0_i32_0 = arith.constant 0 : i32
    return %c0_i32, %arg0 : i32, i32
  }
  func.func @transform_2(%arg0: i32) -> (i32, i32) {
    %c0_i32 = arith.constant 0 : i32
    %c0_i32_0 = arith.constant 0 : i32
    return %c0_i32, %arg0 : i32, i32
  }
  func.func @transform_3(%arg0: i32) -> (i32, i32) {
    %c0_i32 = arith.constant 0 : i32
    %c0_i32_0 = arith.constant 0 : i32
    %c0_i32_1 = arith.constant 0 : i32
    return %c0_i32, %c0_i32_0 : i32, i32
  }
}

</mosaic_0001>

<bundles_post_ra>
// kernel: tpu_custom_call.1
= control target key start
LH: loop header
LB: loop body
LE: loop exit
PB: predicated region body
PF: predicated region fallthrough
CT: control target
= control target key end

     0   :  { %8 = vsyncpa [#allocation5], 0  ;;  %s1572_s0 = inlined_call_operand.hbm [shape: bf16[48,48], index: 0, kind: input, shape index: {}]   ;;  %s1573_s1 = inlined_call_operand.hbm [shape: bf16[48,1024], index: 1, kind: input, shape index: {}]   ;;  %s1574_s2 = inlined_call_operand.hbm [shape: f32[1,1024], index: 2, kind: input, shape index: {}]   ;;  %s1575_s3 = inlined_call_operand.hbm [shape: f32[48,1024], index: 3, kind: output, shape index: {}]  }
   0x1   :  { %9 = vsyncpa [#allocation8], 0 }
   0x2   :  { %11 = vsyncpa [#allocation8 + $0x1], 0 }
   0x3   :  { %12 = vsyncpa [#allocation6], 0  ;;  %s1257_s12 = smov 0   ;;  %s1259_s13 = smov 0  }
   0x4   :  { %s1261_s14 = smov 0   ;;  %s1263_s15 = smov 0  }
   0x5 LB: > { %s1278_s16 = sadd.s32 1, %s1222_s15   ;;  %s46_s17 = sadd.s32 1, %s1218_s14  ;;  %s1222_s15 = sphi %s1263_s15, %s1582_s15   ;;  %s1218_s14 = sphi %s1261_s14, %s1581_s14   ;;  %s1214_s13 = sphi %s1259_s13, %s1580_s13   ;;  %s1210_s12 = sphi %s1257_s12, %s1579_s12  }
   0x6   : > { %s43_s18 = ssub.s32 %s1222_s15, %s1278_s16  ;;  %p53_p0 = scmp.ne.s32.totalorder %s1218_s14, %s1214_s13 }
   0x7   : > { %p44_p1 = scmp.eq.s32.totalorder %s43_s18, 0  ;;  %p54_p2 = scmp.eq.s32.totalorder %s1222_s15, 0 }
   0x8   : > { %p959_p3 = scmp.lt.s32.totalorder %s1222_s15, 4  ;;  %s144_s20 = sand.u32 1, %s1222_s15  }
   0x9   : > { %s1288_s19 = scalar_select %p44_p1, %s1218_s14, %s46_s17  }
   0xa   : > { %p55_p4 = por %p54_p2, %p53_p0  ;;  %s146_s21 = sand.u32 1, %s1218_s14  }
   0xb   : > { %s933_s22 = smul.u32 48, %s146_s21  ;;  %s917_s23 = sshll.u32 %s1222_s15, 3 }
   0xc   : > { %s153_s26 = scalar_lea.hbm %s1573_s1, %s917_s23  ;;  %p1298_p5 = pnand %p959_p3, %p55_p4 }
   0xd   : > { %s154_s28 = sshll.u32 %s153_s26, 4  ;;  %s148_s29 = scalar_lea.vmem [#allocation7], %s933_s22  ;;  %s155_s28 = int_to_ptr.hbm [resolvable:$true] %s154_s28 }
   0xe   : > { %s156_s30 = sshll.u32 %s148_s29, 4  ;;  %s1302_s4 = scalar_lea.sflag [#allocation8], %s144_s20  ;;  %s157_s30 = int_to_ptr.vmem [resolvable:$true] %s156_s30 }
   0xf   : > { %s1062_s5 = sshra.s32 %s155_s28, 4  ;;  %p1066_p7 = pneg %p1298_p5  ;;  %s1063_s5 = int_to_ptr.hbm [resolvable:$true] %s1062_s5 }
  0x10   : > { %s1064_s6 = scalar_lea.hbm %s1063_s5, 48  ;;  %s1069_s9 = scalar_lea.hbm %s1573_s1, 192 }
  0x11   : > { %p1065_p6 = scmp.ne.s32.totalorder %s1063_s5, %s1064_s6  ;;  %p1070_p10 = scmp.lt.s32.totalorder %s1063_s5, %s1573_s1 }
  0x12   : > { %p1071_p11 = scmp.lt.s32.totalorder %s1069_s9, %s1064_s6 }
  0x13   : > { %p1067_p8 = pnand %p1066_p7, %p1065_p6 }
  0x14   : > { %p1072_p12 = por %p1071_p11, %p1070_p10 }
  0x15   : > { %p1068_p9 = pneg %p1067_p8 }
  0x17   : > { %p1073_p13 = pnand %p1072_p12, %p1068_p9 }
  0x19   : > { %1076 = shalt.err (!%p1073_p13)
}
  0x1a   : > { %s1224_s17 = smov 512   ;;  %s1225_s18 = smov 128  }
  0x1b   : > { %s1226_s20 = smov 8   ;;  %s1319_s22 = sadd.s32 4294967295, %s1222_s15  }
  0x1c   : > { %954 = dma.hbm_to_vmem [thread:$0]  (!%p1298_p5), %s155_s28, 768, %s157_s30, %s1302_s4, %s1224_s17, %s1225_s18, %s1226_s20  }
  0x1d   : > { %p59_p0 = scmp.ne.s32.totalorder %s1214_s13, %s1210_s12  ;;  %p60_p1 = scmp.eq.s32.totalorder %s1319_s22, 0 }
  0x1e   : > { %p857_p2 = scmp.ge.s32.totalorder %s1222_s15, 1  ;;  %p117_p3 = scmp.lt.s32.totalorder %s1222_s15, 5 }
  0x1f   : > { %p1328_p4 = por %p60_p1, %p59_p0  ;;  %p858_p6 = scmp.ne.s32.totalorder %s1319_s22, 0 }
  0x20   : > { %p1333_p8 = pnand %p857_p2, %p117_p3  ;;  %s128_s28 = sshll.u32 %s1572_s0, 4  ;;  %s129_s28 = int_to_ptr.hbm [resolvable:$true] %s128_s28 }
  0x21   : > { %s1227_s12 = smov [#allocation4]   ;;  %s862_s30 = sshll.u32 %s146_s21, 1 }
  0x22   : > { %p947_p9 = pneg %p1333_p8  ;;  %s130_s29 = sshll.u32 %s1227_s12, 4  ;;  %s131_s29 = int_to_ptr.vmem [resolvable:$true] %s130_s29 }
  0x23   : > { %s863_s5 = sshll.u32 %s1222_s15, 1  ;;  %s1228_s6 = smov 64  }
  0x24   : > { %p948_p10 = pnand %p947_p9, %p60_p1  ;;  %s1229_s7 = smov 4  }
  0x25   : > { %s174_s10 = scalar_lea.hbm %s1574_s2, %s863_s5  ;;  %s170_s11 = scalar_lea.vmem [#allocation9], %s862_s30 }
  0x26   : > { %950 = dma.hbm_to_vmem [thread:$0]  (!%p948_p10), %s129_s28, 384, %s131_s29, [#allocation5], %s1228_s6, %s1228_s6, %s1229_s7  }
  0x27   : > { %s178_s17 = sshll.u32 %s170_s11, 4  ;;  %s176_s18 = sshll.u32 %s174_s10, 4  ;;  %s179_s17 = int_to_ptr.vmem [resolvable:$true] %s178_s17  ;;  %s177_s18 = int_to_ptr.hbm [resolvable:$true] %s176_s18 }
  0x28   : > { %s1122_s20 = sshra.s32 %s177_s18, 4  ;;  %s1129_s26 = scalar_lea.hbm %s1574_s2, 8  ;;  %s1123_s20 = int_to_ptr.hbm [resolvable:$true] %s1122_s20 }
  0x29   : > { %s1124_s25 = scalar_lea.hbm %s1123_s20, 2  ;;  %p1130_p0 = scmp.lt.s32.totalorder %s1123_s20, %s1574_s2 }
  0x2a   : > { %p1125_p11 = scmp.ne.s32.totalorder %s1123_s20, %s1124_s25  ;;  %p1131_p2 = scmp.lt.s32.totalorder %s1129_s26, %s1124_s25 }
  0x2c   : > { %p1127_p12 = pnand %p1125_p11, %p1066_p7  ;;  %p1132_p3 = por %p1131_p2, %p1130_p0 }
  0x2e   : > { %p1128_p13 = pneg %p1127_p12 }
  0x30   : > { %p1133_p9 = pnand %p1132_p3, %p1128_p13 }
  0x32   : > { %1136 = shalt.err (!%p1133_p9)
}
  0x33   : > { %957 = dma.hbm_to_vmem [thread:$0]  (!%p1298_p5), %s177_s18, 32, %s179_s17, %s1302_s4  }
  0x34   : > { %187 = sbr.rel (%p1333_p8) target bundleno = 781 (0x30d), region = 32 }
  0x39   : > { %1197 = dma.done.wait (%p60_p1), [#allocation5], 384  }
  0x3a   : > { %1199 = vsyncadd (%p60_p1), [#allocation5], 4294966912  ;;  %s194_s29 = sand.u32 1, %s1319_s22   ;;  %s196_s30 = sand.u32 1, %s1214_s13  }
  0x3b   : > { %s934_s5 = smul.u32 48, %s196_s30  ;;  %s195_s6 = scalar_lea.sflag [#allocation8], %s194_s29 }
  0x3d   : > { %s1370_s7 = scalar_lea.vmem [#allocation7], %s934_s5 }
  0x3e   : > { %1201 = dma.done.wait (%p1328_p4), %s195_s6, 800  }
  0x3f   : > { %1203 = vsyncadd (%p1328_p4), %s195_s6, 4294966496  ;;  %s1376_s27 = sshll.u32 %s196_s30, 1  ;;  %238 = sbr.rel (%p858_p6) target bundleno = 81 (0x51), region = 48 }
  0x40   : > { %s208_s4 = scalar_lea.vmem [#allocation9], %s1376_s27 }
  0x44   : > { %vm239_vm0 = vcmask 7168   ;;  %v1230_v0 = vmov -inf   ;;  %v1231_v1 = vmov 0.0  }
  0x45   : > { %240 = vst.msk [vmem:[#allocation2] sm:$0xff] %vm239_vm0, %v1230_v0 }
  0x46   : > { %241 = vst.msk [vmem:[#allocation2 + $0x8] sm:$0xff] %vm239_vm0, %v1230_v0 }
  0x47   : > { %242 = vst.msk [vmem:[#allocation2 + $0x10] sm:$0xff] %vm239_vm0, %v1230_v0 }
  0x48   : > { %243 = vst.msk [vmem:[#allocation2 + $0x18] sm:$0xff] %vm239_vm0, %v1230_v0 }
  0x49   : > { %244 = vst.msk [vmem:[#allocation2 + $0x20] sm:$0xff] %vm239_vm0, %v1230_v0 }
  0x4a   : > { %245 = vst.msk [vmem:[#allocation2 + $0x28] sm:$0xff] %vm239_vm0, %v1230_v0 }
  0x4b   : > { %246 = vst.msk [vmem:[#allocation3] sm:$0xff] %vm239_vm0, %v1231_v1 }
  0x4c   : > { %247 = vst.msk [vmem:[#allocation3 + $0x8] sm:$0xff] %vm239_vm0, %v1231_v1 }
  0x4d   : > { %248 = vst.msk [vmem:[#allocation3 + $0x10] sm:$0xff] %vm239_vm0, %v1231_v1 }
  0x4e   : > { %249 = vst.msk [vmem:[#allocation3 + $0x18] sm:$0xff] %vm239_vm0, %v1231_v1 }
  0x4f   : > { %250 = vst.msk [vmem:[#allocation3 + $0x20] sm:$0xff] %vm239_vm0, %v1231_v1 }
  0x50   : > { %251 = vst.msk [vmem:[#allocation3 + $0x28] sm:$0xff] %vm239_vm0, %v1231_v1 }
  0x51 PF: > { %v898_v2 = vld [vmem:[%s1370_s7 + $0x20] sm:$0xf]  ;;  %v926_v3 = vld [vmem:[%s1370_s7 + $0x24] sm:$0xf0]  ;;  %v925_v4 = vld [vmem:[%s1370_s7 + $0x24] sm:$0xf] }
  0x52   : > { %v899_v5 = vor.u32 %v926_v3, %v898_v2  ;;  %v900_v6 = vld [vmem:[%s1370_s7 + $0x28] sm:$0xf0]  ;;  %v890_v7 = vld [vmem:[%s1370_s7 + $0x10] sm:$0xf]  ;;  %v924_v8 = vld [vmem:[%s1370_s7 + $0x14] sm:$0xf0] }
  0x53   : > { %v903_v9 = vor.u32 %v925_v4, %v900_v6  ;;  %v923_v10 = vld [vmem:[%s1370_s7 + $0x14] sm:$0xf]  ;;  %v892_v11 = vld [vmem:[%s1370_s7 + $0x18] sm:$0xf0]  ;;  %v891_v12 = vor.u32 %v924_v8, %v890_v7  ;;  %v882_v14 = vld [vmem:[%s1370_s7] sm:$0xf] }
  0x54   : > { %330 = vmatpush.bf16.msra.mxu0 %v899_v5  ;;  %927 = vmatpush.bf16.msra.mxu2 %v899_v5  ;;  %v895_v13 = vor.u32 %v923_v10, %v892_v11  ;;  %v922_v15 = vld [vmem:[%s1370_s7 + $0x4] sm:$0xf0]  ;;  %v921_v16 = vld [vmem:[%s1370_s7 + $0x4] sm:$0xf]  ;;  %v884_v17 = vld [vmem:[%s1370_s7 + $0x8] sm:$0xf0] }
  0x55   : > { %354 = vmatpush.bf16.msra.mxu1 %v903_v9  ;;  %930 = vmatpush.bf16.msra.mxu3 %v903_v9  ;;  %v883_v18 = vor.u32 %v922_v15, %v882_v14  ;;  %v887_v19 = vor.u32 %v921_v16, %v884_v17  ;;  %v918_v20 = vld [vmem:[#allocation4] sm:$0xff]  ;;  %v919_v21 = vld [vmem:[#allocation4 + $0x8] sm:$0xff]  ;;  %vm315_vm1 = vcmask 392192   ;;  %v920_v22 = vld [vmem:[#allocation4 + $0x10] sm:$0xff]  ;;  %s910_s23 = sshll.u32 %s1319_s22, 8  ;;  %v1232_v56 = vmov 0  }
  0x56   : > { %v264_v23 = vld [vmem:[%s208_s4] sm:$0x3]  ;;  %s374_s24 = sshra.s32 %s910_s23, 7  ;;  %1008 = vset.pattern.permute.xlu0 %v1232_v56  ;;  %1009 = vset.pattern.permute.xlu2 %v1232_v56  ;;  %v1458_v57 = vld [vmem:[#allocation2] sm:$0xff]  ;;  %vm540_vm2 = vcmask 7168   ;;  %v1468_v61 = vld [vmem:[#allocation2 + $0x10] sm:$0xff] }
  0x57   : > { %v266_v24 = vperm.slane %v264_v23, 0  ;;  %s911_s8 = sshll.u32 %s374_s24, 3  ;;  %v267_v25 = vperm.slane %v264_v23, 1  ;;  %1010 = vset.pattern.permute.xlu1 %v1232_v56  ;;  %v1470_v63 = vld [vmem:[#allocation2 + $0x8] sm:$0xff]  ;;  %v1488_v5 = vld [vmem:[#allocation2 + $0x18] sm:$0xff]  ;;  %v1498_v9 = vld [vmem:[#allocation2 + $0x20] sm:$0xff] }
  0x58   : > { %331 = vmatpush.bf16.msra.mxu0 %v891_v12  ;;  %928 = vmatpush.bf16.msra.mxu2 %v891_v12  ;;  %s1400_s9 = scalar_lea.vmem [#allocation10], %s911_s8  ;;  %p912_p5 = scmp.ne.s32.totalorder %s1319_s22, 3 }
  0x59   : > { %355 = vmatpush.bf16.msra.mxu1 %v895_v13  ;;  %931 = vmatpush.bf16.msra.mxu3 %v895_v13  ;;  %v1508_v13 = vld [vmem:[#allocation2 + $0x28] sm:$0xff] }
  0x5c   : > { %332 = vmatpush.bf16.msra.mxu0 %v883_v18  ;;  %929 = vmatpush.bf16.msra.mxu2 %v883_v18 }
  0x5d   : > { %356 = vmatpush.bf16.msra.mxu1 %v887_v19  ;;  %932 = vmatpush.bf16.msra.mxu3 %v887_v19 }
  0x5f   : > { %904 = vmatmul.msk.bf16.vlgmr.msra.gmra.mxu0 %vm315_vm1, %v918_v20  ;;  %905 = vmatmul.msk.bf16.vlgmr.msra.gmra.mxu2 %vm315_vm1, %v919_v21 }
  0x60   : > { %907 = vmatmul.msk.bf16.vlgmr.msra.gmra.mxu1 %vm315_vm1, %v918_v20  ;;  %908 = vmatmul.msk.bf16.vlgmr.msra.gmra.mxu3 %vm315_vm1, %v919_v21 }
  0x6f   : > { %906 = vmatmul.msk.bf16.gmra.mxu2 %vm315_vm1, %v920_v22 }
  0x70   : > { %909 = vmatmul.msk.bf16.gmra.mxu3 %vm315_vm1, %v920_v22 }
  0xdc   : > { %v334_v26 = vpop.f32.mrf.mxu0 }
  0xdd   : > { %v1396_v27 = vadd.f32 %v334_v26, %v266_v24  ;;  %v358_v28 = vpop.f32.mrf.mxu1 }
  0xde   : > { %v1398_v29 = vadd.f32 %v358_v28, %v267_v25 }
  0xdf   : > { %378 = vst [vmem:[%s1400_s9] sm:$0xff] %v1396_v27 }
  0xe0   : > { %379 = vst [vmem:[%s1400_s9 + $0x8] sm:$0xff] %v1398_v29  ;;  %v396_v30 = vmax.f32 %v1396_v27, %v1398_v29 }
  0xe2   : > { %397 = vmax.xlane.f32.xlu0 %v396_v30  ;;  %v339_v31 = vpop.f32.mrf.mxu2 }
  0xe3   : > { %v1408_v32 = vadd.f32 %v339_v31, %v266_v24  ;;  %v363_v33 = vpop.f32.mrf.mxu3 }
  0xe4   : > { %v1410_v34 = vadd.f32 %v363_v33, %v267_v25  ;;  %v336_v35 = vpop.f32.mrf.mxu0 }
  0xe5   : > { %382 = vst [vmem:[%s1400_s9 + $0x80] sm:$0xff] %v1408_v32  ;;  %v1414_v36 = vadd.f32 %v336_v35, %v266_v24  ;;  %v360_v37 = vpop.f32.mrf.mxu1 }
  0xe6   : > { %383 = vst [vmem:[%s1400_s9 + $0x88] sm:$0xff] %v1410_v34  ;;  %v1418_v38 = vadd.f32 %v360_v37, %v267_v25  ;;  %v402_v39 = vmax.f32 %v1408_v32, %v1410_v34 }
  0xe7   : > { %380 = vst [vmem:[%s1400_s9 + $0x40] sm:$0xff] %v1414_v36 }
  0xe8   : > { %381 = vst [vmem:[%s1400_s9 + $0x48] sm:$0xff] %v1418_v38  ;;  %403 = vmax.xlane.f32.xlu1 %v402_v39  ;;  %v399_v40 = vmax.f32 %v1414_v36, %v1418_v38 }
  0xea   : > { %400 = vmax.xlane.f32.xlu0 %v399_v40  ;;  %v341_v41 = vpop.f32.mrf.mxu2 }
  0xeb   : > { %v1428_v42 = vadd.f32 %v341_v41, %v266_v24  ;;  %v365_v43 = vpop.f32.mrf.mxu3 }
  0xec   : > { %v1430_v44 = vadd.f32 %v365_v43, %v267_v25 }
  0xed   : > { %384 = vst [vmem:[%s1400_s9 + $0xc0] sm:$0xff] %v1428_v42 }
  0xee   : > { %385 = vst [vmem:[%s1400_s9 + $0xc8] sm:$0xff] %v1430_v44  ;;  %v405_v45 = vmax.f32 %v1428_v42, %v1430_v44 }
  0xf0   : > { %406 = vmax.xlane.f32.xlu1 %v405_v45 }
  0xf2   : > { %v344_v46 = vpop.f32.mrf.mxu2 }
  0xf3   : > { %v1438_v47 = vadd.f32 %v344_v46, %v266_v24  ;;  %v368_v48 = vpop.f32.mrf.mxu3 }
  0xf4   : > { %v1440_v49 = vadd.f32 %v368_v48, %v267_v25 }
  0xf5   : > { %386 = vst [vmem:[%s1400_s9 + $0x100] sm:$0xff] %v1438_v47 }
  0xf6   : > { %387 = vst [vmem:[%s1400_s9 + $0x108] sm:$0xff] %v1440_v49  ;;  %v408_v50 = vmax.f32 %v1438_v47, %v1440_v49 }
  0xf8   : > { %409 = vmax.xlane.f32.xlu2 %v408_v50 }
  0xfa   : > { %v346_v51 = vpop.f32.mrf.mxu2 }
  0xfb   : > { %v1448_v52 = vadd.f32 %v346_v51, %v266_v24  ;;  %v370_v53 = vpop.f32.mrf.mxu3 }
  0xfc   : > { %v1450_v54 = vadd.f32 %v370_v53, %v267_v25 }
  0xfd   : > { %388 = vst [vmem:[%s1400_s9 + $0x140] sm:$0xff] %v1448_v52 }
  0xfe   : > { %389 = vst [vmem:[%s1400_s9 + $0x148] sm:$0xff] %v1450_v54  ;;  %v411_v55 = vmax.f32 %v1448_v52, %v1450_v54 }
 0x100   : > { %412 = vmax.xlane.f32.xlu2 %v411_v55 }
 0x155   : > { %v398_v58 = vpop.xlane.xlu0 %397 }
 0x156   : > { %v1461_v59 = vmax.f32 %v1458_v57, %v398_v58 }
 0x158   : > { %v426_v60 = vsub.f32 %v1458_v57, %v1461_v59  ;;  %547 = vst.msk [vmem:[#allocation2] sm:$0xff] %vm540_vm2, %v1461_v59  ;;  %452 = vperm.xlu0 %1008, %v1461_v59  }
 0x15b   : > { %v404_v62 = vpop.xlane.xlu1 %403 }
 0x15c   : > { %v1473_v0 = vmax.f32 %v1468_v61, %v404_v62 }
 0x15d   : > { %v401_v1 = vpop.xlane.xlu0 %400 }
 0x15e   : > { %v428_v2 = vsub.f32 %v1468_v61, %v1473_v0  ;;  %549 = vst.msk [vmem:[#allocation2 + $0x10] sm:$0xff] %vm540_vm2, %v1473_v0  ;;  %v1480_v3 = vmax.f32 %v1470_v63, %v401_v1  ;;  %462 = vperm.xlu2 %1009, %v1473_v0  }
 0x160   : > { %v427_v4 = vsub.f32 %v1470_v63, %v1480_v3  ;;  %548 = vst.msk [vmem:[#allocation2 + $0x8] sm:$0xff] %vm540_vm2, %v1480_v3  ;;  %457 = vperm.xlu1 %1010, %v1480_v3   ;;  %v423_v63 = vld [vmem:[#allocation3 + $0x18] sm:$0xff]  ;;  %v421_v3 = vld [vmem:[#allocation3 + $0x8] sm:$0xff] }
 0x163   : > { %v407_v6 = vpop.xlane.xlu1 %406 }
 0x164   : > { %v1491_v7 = vmax.f32 %v1488_v5, %v407_v6 }
 0x166   : > { %v429_v8 = vsub.f32 %v1488_v5, %v1491_v7  ;;  %550 = vst.msk [vmem:[#allocation2 + $0x18] sm:$0xff] %vm540_vm2, %v1491_v7  ;;  %467 = vperm.xlu2 %1009, %v1491_v7  }
 0x168   : > { %v438_v61 = vmul.f32 1.442695, %v429_v8 }
 0x16b   : > { %v410_v10 = vpop.xlane.xlu2 %409 }
 0x16c   : > { %v1501_v11 = vmax.f32 %v1498_v9, %v410_v10 }
 0x16e   : > { %v430_v12 = vsub.f32 %v1498_v9, %v1501_v11  ;;  %551 = vst.msk [vmem:[#allocation2 + $0x20] sm:$0xff] %vm540_vm2, %v1501_v11  ;;  %472 = vperm.xlu1 %1010, %v1501_v11  }
 0x170   : > { %v440_v7 = vmul.f32 1.442695, %v430_v12 }
 0x173   : > { %v413_v14 = vpop.xlane.xlu2 %412 }
 0x174   : > { %v1511_v15 = vmax.f32 %v1508_v13, %v413_v14 }
 0x176   : > { %v431_v16 = vsub.f32 %v1508_v13, %v1511_v15  ;;  %552 = vst.msk [vmem:[#allocation2 + $0x28] sm:$0xff] %vm540_vm2, %v1511_v15  ;;  %477 = vperm.xlu2 %1009, %v1511_v15   ;;  %v425_v15 = vld [vmem:[#allocation3 + $0x28] sm:$0xff] }
 0x178   : > { %v442_v57 = vmul.f32 1.442695, %v431_v16 }
 0x1b8   : > { %v463_v17 = vpop.permute.xlu2 %462 }
 0x1b9   : > { %v484_v18 = vsub.f32 %v1408_v32, %v463_v17  ;;  %v485_v19 = vsub.f32 %v1410_v34, %v463_v17 }
 0x1bb   : > { %v500_v20 = vmul.f32 1.442695, %v484_v18  ;;  %v502_v21 = vmul.f32 1.442695, %v485_v19 }
 0x1bd   : > { %1011 = vpow2.f32 %v500_v20 }
 0x1be   : > { %1013 = vpow2.f32 %v502_v21  ;;  %v436_v21 = vmul.f32 1.442695, %v428_v2  ;;  %v420_v2 = vld [vmem:[#allocation3] sm:$0xff] }
 0x1c0   : > { %v468_v25 = vpop.permute.xlu2 %467 }
 0x1c1   : > { %v486_v31 = vsub.f32 %v1428_v42, %v468_v25  ;;  %v487_v34 = vsub.f32 %v1430_v44, %v468_v25  ;;  %v432_v25 = vmul.f32 1.442695, %v426_v60 }
 0x1c3   : > { %v1012_v22 = vpop.eup %1011  ;;  %v504_v35 = vmul.f32 1.442695, %v486_v31  ;;  %v506_v37 = vmul.f32 1.442695, %v487_v34 }
 0x1c4   : > { %v1014_v23 = vpop.eup %1013 }
 0x1c5   : > { %v522_v24 = vadd.f32 %v1014_v23, %v1012_v22 }
 0x1c7   : > { %523 = vadd.xlane.f32.xlu2 %v522_v24 }
 0x1ca   : > { %v453_v26 = vpop.permute.xlu0 %452 }
 0x1cb   : > { %v480_v28 = vsub.f32 %v1396_v27, %v453_v26  ;;  %v481_v30 = vsub.f32 %v1398_v29, %v453_v26  ;;  %v434_v26 = vmul.f32 1.442695, %v427_v4 }
 0x1cd   : > { %v492_v33 = vmul.f32 1.442695, %v480_v28  ;;  %v494_v32 = vmul.f32 1.442695, %v481_v30 }
 0x1cf   : > { %1015 = vpow2.f32 %v492_v33 }
 0x1d0   : > { %1017 = vpow2.f32 %v494_v32  ;;  %v478_v39 = vpop.permute.xlu2 %477 }
 0x1d1   : > { %1019 = vpow2.f32 %v504_v35  ;;  %v490_v27 = vsub.f32 %v1448_v52, %v478_v39  ;;  %v491_v44 = vsub.f32 %v1450_v54, %v478_v39 }
 0x1d2   : > { %v458_v40 = vpop.permute.xlu1 %457  ;;  %1021 = vpow2.f32 %v506_v37 }
 0x1d3   : > { %v482_v41 = vsub.f32 %v1414_v36, %v458_v40  ;;  %v483_v43 = vsub.f32 %v1418_v38, %v458_v40  ;;  %v512_v50 = vmul.f32 1.442695, %v490_v27  ;;  %v514_v51 = vmul.f32 1.442695, %v491_v44  ;;  %v424_v40 = vld [vmem:[#allocation3 + $0x20] sm:$0xff] }
 0x1d5   : > { %v1016_v45 = vpop.eup %1015  ;;  %v496_v29 = vmul.f32 1.442695, %v482_v41  ;;  %v498_v42 = vmul.f32 1.442695, %v483_v43 }
 0x1d6   : > { %v1018_v46 = vpop.eup %1017 }
 0x1d7   : > { %1023 = vpow2.f32 %v496_v29  ;;  %v516_v48 = vadd.f32 %v1018_v46, %v1016_v45  ;;  %v1020_v53 = vpop.eup %1019 }
 0x1d8   : > { %1025 = vpow2.f32 %v498_v42  ;;  %v1022_v36 = vpop.eup %1021 }
 0x1d9   : > { %517 = vadd.xlane.f32.xlu1 %v516_v48  ;;  %1027 = vpow2.f32 %v512_v50  ;;  %v525_v52 = vadd.f32 %v1022_v36, %v1020_v53 }
 0x1da   : > { %1029 = vpow2.f32 %v514_v51 }
 0x1dd   : > { %v1024_v55 = vpop.eup %1023 }
 0x1de   : > { %v1026_v38 = vpop.eup %1025 }
 0x1df   : > { %v519_v56 = vadd.f32 %v1026_v38, %v1024_v55  ;;  %v1028_v1 = vpop.eup %1027 }
 0x1e0   : > { %v473_v58 = vpop.permute.xlu1 %472  ;;  %v1030_v14 = vpop.eup %1029 }
 0x1e1   : > { %520 = vadd.xlane.f32.xlu0 %v519_v56  ;;  %v488_v62 = vsub.f32 %v1438_v47, %v473_v58  ;;  %v489_v54 = vsub.f32 %v1440_v49, %v473_v58  ;;  %526 = vadd.xlane.f32.xlu1 %v525_v52  ;;  %v531_v17 = vadd.f32 %v1030_v14, %v1028_v1  ;;  %v422_v49 = vld [vmem:[#allocation3 + $0x10] sm:$0xff] }
 0x1e3   : > { %v508_v6 = vmul.f32 1.442695, %v488_v62  ;;  %v510_v10 = vmul.f32 1.442695, %v489_v54 }
 0x1e5   : > { %1031 = vpow2.f32 %v508_v6 }
 0x1e6   : > { %1033 = vpow2.f32 %v510_v10 }
 0x1e7   : > { %1035 = vpow2.f32 %v436_v21 }
 0x1e8   : > { %1037 = vpow2.f32 %v432_v25 }
 0x1e9   : > { %532 = vadd.xlane.f32.xlu0 %v531_v17  ;;  %1039 = vpow2.f32 %v434_v26 }
 0x1ea   : > { %1041 = vpow2.f32 %v438_v61 }
 0x1eb   : > { %v1032_v18 = vpop.eup %1031  ;;  %1043 = vpow2.f32 %v442_v57 }
 0x1ec   : > { %v1034_v19 = vpop.eup %1033  ;;  %1045 = vpow2.f32 %v440_v7 }
 0x1ed   : > { %v528_v20 = vadd.f32 %v1034_v19, %v1032_v18  ;;  %v1036_v47 = vpop.eup %1035 }
 0x1ee   : > { %v446_v22 = vmul.f32 %v1036_v47, %v422_v49  ;;  %v1038_v0 = vpop.eup %1037 }
 0x1ef   : > { %529 = vadd.xlane.f32.xlu2 %v528_v20  ;;  %v444_v28 = vmul.f32 %v1038_v0, %v420_v2  ;;  %v1040_v59 = vpop.eup %1039 }
 0x1f0   : > { %v1042_v60 = vpop.eup %1041  ;;  %v445_v5 = vmul.f32 %v1040_v59, %v421_v3 }
 0x1f1   : > { %v447_v4 = vmul.f32 %v1042_v60, %v423_v63  ;;  %v1044_v13 = vpop.eup %1043 }
 0x1f2   : > { %v449_v16 = vmul.f32 %v1044_v13, %v425_v15  ;;  %v1046_v39 = vpop.eup %1045 }
 0x1f3   : > { %v448_v9 = vmul.f32 %v1046_v39, %v424_v40 }
 0x23a   : > { %v524_v23 = vpop.xlane.xlu2 %523 }
 0x23b   : > { %v536_v24 = vadd.f32 %v524_v23, %v446_v22 }
 0x23d   : > { %543 = vst.msk [vmem:[#allocation3 + $0x10] sm:$0xff] %vm540_vm2, %v536_v24 }
 0x24c   : > { %v518_v30 = vpop.xlane.xlu1 %517 }
 0x24d   : > { %v534_v31 = vadd.f32 %v518_v30, %v444_v28 }
 0x24f   : > { %541 = vst.msk [vmem:[#allocation3] sm:$0xff] %vm540_vm2, %v534_v31 }
 0x254   : > { %v527_v8 = vpop.xlane.xlu1 %526  ;;  %v521_v33 = vpop.xlane.xlu0 %520 }
 0x255   : > { %v537_v32 = vadd.f32 %v527_v8, %v447_v4  ;;  %v535_v34 = vadd.f32 %v521_v33, %v445_v5 }
 0x257   : > { %544 = vst.msk [vmem:[#allocation3 + $0x18] sm:$0xff] %vm540_vm2, %v537_v32 }
 0x258   : > { %542 = vst.msk [vmem:[#allocation3 + $0x8] sm:$0xff] %vm540_vm2, %v535_v34 }
 0x25c   : > { %v533_v35 = vpop.xlane.xlu0 %532 }
 0x25d   : > { %v539_v37 = vadd.f32 %v533_v35, %v449_v16 }
 0x25f   : > { %546 = vst.msk [vmem:[#allocation3 + $0x28] sm:$0xff] %vm540_vm2, %v539_v37 }
 0x261   : > { %556 = sbr.rel (%p912_p5) target bundleno = 775 (0x307), region = 52 }
 0x262   : > { %v530_v11 = vpop.xlane.xlu2 %529 }
 0x263   : > { %v538_v12 = vadd.f32 %v530_v11, %v448_v9 }
 0x265   : > { %545 = vst.msk [vmem:[#allocation3 + $0x20] sm:$0xff] %vm540_vm2, %v538_v12 }
 0x266   : > { %v613_v41 = vld [vmem:[#allocation3 + $0x10] sm:$0xff]  ;;  %v1233_v43 = vmov 0   ;;  %v611_v45 = vld [vmem:[#allocation3] sm:$0xff]  ;;  %v614_v27 = vld [vmem:[#allocation3 + $0x18] sm:$0xff] }
 0x267   : > { %1048 = vset.pattern.permute.xlu1 %v1233_v43  ;;  %1047 = vset.pattern.permute.xlu0 %v1233_v43  ;;  %1050 = vlog2.f32 %v613_v41  ;;  %v612_v29 = vld [vmem:[#allocation3 + $0x8] sm:$0xff]  ;;  %v607_v48 = vld [vmem:[#allocation2 + $0x10] sm:$0xff]  ;;  %v605_v53 = vld [vmem:[#allocation2] sm:$0xff] }
 0x268   : > { %1052 = vlog2.f32 %v611_v45  ;;  %1049 = vset.pattern.permute.xlu2 %v1233_v43  ;;  %v616_v46 = vld [vmem:[#allocation3 + $0x28] sm:$0xff]  ;;  %v609_v62 = vld [vmem:[#allocation2 + $0x20] sm:$0xff]  ;;  %v606_v17 = vld [vmem:[#allocation2 + $0x8] sm:$0xff] }
 0x269   : > { %1054 = vlog2.f32 %v614_v27  ;;  %v608_v10 = vld [vmem:[#allocation2 + $0x18] sm:$0xff]  ;;  %v610_v47 = vld [vmem:[#allocation2 + $0x28] sm:$0xff] }
 0x26a   : > { %1056 = vlog2.f32 %v612_v29  ;;  %v589_v22 = vld [vmem:[#allocation10 + $0x100] sm:$0xff]  ;;  %v590_v23 = vld [vmem:[#allocation10 + $0x108] sm:$0xff]  ;;  %v591_v24 = vld [vmem:[#allocation10 + $0x110] sm:$0xff] }
 0x26b   : > { %v592_v25 = vld [vmem:[#allocation10 + $0x118] sm:$0xff]  ;;  %v593_v61 = vld [vmem:[#allocation10 + $0x120] sm:$0xff]  ;;  %v594_v0 = vld [vmem:[#allocation10 + $0x128] sm:$0xff] }
 0x26c   : > { %v615_v42 = vld [vmem:[#allocation3 + $0x20] sm:$0xff]  ;;  %v597_v5 = vld [vmem:[#allocation10 + $0x140] sm:$0xff]  ;;  %v598_v7 = vld [vmem:[#allocation10 + $0x148] sm:$0xff] }
 0x26d   : > { %1058 = vlog2.f32 %v615_v42  ;;  %v1051_v44 = vpop.eup %1050  ;;  %v595_v31 = vld [vmem:[#allocation10 + $0x130] sm:$0xff]  ;;  %v596_v59 = vld [vmem:[#allocation10 + $0x138] sm:$0xff]  ;;  %v601_v34 = vld [vmem:[#allocation10 + $0x160] sm:$0xff] }
 0x26e   : > { %1060 = vlog2.f32 %v616_v46  ;;  %v1053_v50 = vpop.eup %1052  ;;  %v622_v51 = vmul.f32 0.6931472, %v1051_v44  ;;  %v599_v8 = vld [vmem:[#allocation10 + $0x150] sm:$0xff]  ;;  %v600_v33 = vld [vmem:[#allocation10 + $0x158] sm:$0xff]  ;;  %v602_v13 = vld [vmem:[#allocation10 + $0x168] sm:$0xff] }
 0x26f   : > { %v1055_v36 = vpop.eup %1054  ;;  %v618_v55 = vmul.f32 0.6931472, %v1053_v50  ;;  %v603_v37 = vld [vmem:[#allocation10 + $0x170] sm:$0xff]  ;;  %v604_v40 = vld [vmem:[#allocation10 + $0x178] sm:$0xff]  ;;  %v573_v43 = vld [vmem:[#allocation10 + $0x80] sm:$0xff] }
 0x270   : > { %v1057_v38 = vpop.eup %1056  ;;  %v631_v56 = vadd.f32 %v622_v51, %v607_v48  ;;  %v624_v54 = vmul.f32 0.6931472, %v1055_v36  ;;  %v574_v45 = vld [vmem:[#allocation10 + $0x88] sm:$0xff]  ;;  %v575_v27 = vld [vmem:[#allocation10 + $0x90] sm:$0xff]  ;;  %v576_v29 = vld [vmem:[#allocation10 + $0x98] sm:$0xff] }
 0x271   : > { %v629_v58 = vadd.f32 %v618_v55, %v605_v53  ;;  %v620_v14 = vmul.f32 0.6931472, %v1057_v38  ;;  %v577_v46 = vld [vmem:[#allocation10 + $0xa0] sm:$0xff]  ;;  %v578_v44 = vld [vmem:[#allocation10 + $0xa8] sm:$0xff]  ;;  %v579_v53 = vld [vmem:[#allocation10 + $0xb0] sm:$0xff] }
 0x272   : > { %647 = vperm.xlu1 %1048, %v631_v56   ;;  %v632_v19 = vadd.f32 %v624_v54, %v608_v10  ;;  %v580_v55 = vld [vmem:[#allocation10 + $0xb8] sm:$0xff]  ;;  %v558_v54 = vld [vmem:[#allocation10 + $0x8] sm:$0xff] }
 0x273   : > { %v1059_v52 = vpop.eup %1058  ;;  %637 = vperm.xlu0 %1047, %v629_v58   ;;  %v630_v21 = vadd.f32 %v620_v14, %v606_v17  ;;  %v557_v58 = vld [vmem:[#allocation10] sm:$0xff]  ;;  %v560_v10 = vld [vmem:[#allocation10 + $0x18] sm:$0xff] }
 0x274   : > { %v626_v1 = vmul.f32 0.6931472, %v1059_v52  ;;  %v1061_v6 = vpop.eup %1060  ;;  %v561_v17 = vld [vmem:[#allocation10 + $0x20] sm:$0xff] }
 0x275   : > { %v628_v20 = vmul.f32 0.6931472, %v1061_v6  ;;  %v559_v6 = vld [vmem:[#allocation10 + $0x10] sm:$0xff] }
 0x276   : > { %v633_v18 = vadd.f32 %v626_v1, %v609_v62 }
 0x277   : > { %v634_v49 = vadd.f32 %v628_v20, %v610_v47 }
 0x278   : > { %657 = vperm.xlu2 %1049, %v633_v18  }
 0x27a   : > { %652 = vperm.xlu1 %1048, %v632_v19   ;;  %v562_v19 = vld [vmem:[#allocation10 + $0x28] sm:$0xff] }
 0x27b   : > { %642 = vperm.xlu0 %1047, %v630_v21   ;;  %v563_v21 = vld [vmem:[#allocation10 + $0x30] sm:$0xff] }
 0x280   : > { %662 = vperm.xlu2 %1049, %v634_v49   ;;  %v564_v49 = vld [vmem:[#allocation10 + $0x38] sm:$0xff] }
 0x2d2   : > { %v658_v26 = vpop.permute.xlu2 %657 }
 0x2d3   : > { %v697_v2 = vsub.f32 %v589_v22, %v658_v26  ;;  %v698_v28 = vsub.f32 %v590_v23, %v658_v26  ;;  %v699_v30 = vsub.f32 %v591_v24, %v658_v26  ;;  %v700_v57 = vsub.f32 %v592_v25, %v658_v26  ;;  %v581_v25 = vld [vmem:[#allocation10 + $0xc0] sm:$0xff] }
 0x2d4   : > { %v701_v60 = vsub.f32 %v593_v61, %v658_v26  ;;  %v702_v63 = vsub.f32 %v594_v0, %v658_v26  ;;  %v703_v3 = vsub.f32 %v595_v31, %v658_v26  ;;  %v704_v4 = vsub.f32 %v596_v59, %v658_v26  ;;  %v582_v61 = vld [vmem:[#allocation10 + $0xc8] sm:$0xff]  ;;  %v585_v31 = vld [vmem:[#allocation10 + $0xe0] sm:$0xff] }
 0x2d5   : > { %745 = vst [vmem:[#allocation10 + $0x100] sm:$0xff] %v697_v2  ;;  %v583_v2 = vld [vmem:[#allocation10 + $0xd0] sm:$0xff]  ;;  %v586_v59 = vld [vmem:[#allocation10 + $0xe8] sm:$0xff] }
 0x2d6   : > { %746 = vst [vmem:[#allocation10 + $0x108] sm:$0xff] %v698_v28  ;;  %v584_v28 = vld [vmem:[#allocation10 + $0xd8] sm:$0xff] }
 0x2d7   : > { %747 = vst [vmem:[#allocation10 + $0x110] sm:$0xff] %v699_v30 }
 0x2d8   : > { %748 = vst [vmem:[#allocation10 + $0x118] sm:$0xff] %v700_v57 }
 0x2d9   : > { %749 = vst [vmem:[#allocation10 + $0x120] sm:$0xff] %v701_v60 }
 0x2da   : > { %750 = vst [vmem:[#allocation10 + $0x128] sm:$0xff] %v702_v63  ;;  %v663_v32 = vpop.permute.xlu2 %662  ;;  %v587_v63 = vld [vmem:[#allocation10 + $0xf0] sm:$0xff] }
 0x2db   : > { %751 = vst [vmem:[#allocation10 + $0x130] sm:$0xff] %v703_v3  ;;  %v705_v15 = vsub.f32 %v597_v5, %v663_v32  ;;  %v706_v16 = vsub.f32 %v598_v7, %v663_v32  ;;  %v707_v35 = vsub.f32 %v599_v8, %v663_v32  ;;  %v708_v39 = vsub.f32 %v600_v33, %v663_v32  ;;  %v565_v33 = vld [vmem:[#allocation10 + $0x40] sm:$0xff] }
 0x2dc   : > { %752 = vst [vmem:[#allocation10 + $0x138] sm:$0xff] %v704_v4  ;;  %v709_v9 = vsub.f32 %v601_v34, %v663_v32  ;;  %v710_v11 = vsub.f32 %v602_v13, %v663_v32  ;;  %v711_v12 = vsub.f32 %v603_v37, %v663_v32  ;;  %v712_v41 = vsub.f32 %v604_v40, %v663_v32  ;;  %v588_v4 = vld [vmem:[#allocation10 + $0xf8] sm:$0xff]  ;;  %v566_v34 = vld [vmem:[#allocation10 + $0x48] sm:$0xff]  ;;  %v569_v37 = vld [vmem:[#allocation10 + $0x60] sm:$0xff] }
 0x2dd   : > { %753 = vst [vmem:[#allocation10 + $0x140] sm:$0xff] %v705_v15  ;;  %v567_v15 = vld [vmem:[#allocation10 + $0x50] sm:$0xff]  ;;  %v570_v40 = vld [vmem:[#allocation10 + $0x68] sm:$0xff] }
 0x2de   : > { %754 = vst [vmem:[#allocation10 + $0x148] sm:$0xff] %v706_v16  ;;  %v568_v16 = vld [vmem:[#allocation10 + $0x58] sm:$0xff] }
 0x2df   : > { %755 = vst [vmem:[#allocation10 + $0x150] sm:$0xff] %v707_v35 }
 0x2e0   : > { %756 = vst [vmem:[#allocation10 + $0x158] sm:$0xff] %v708_v39 }
 0x2e1   : > { %757 = vst [vmem:[#allocation10 + $0x160] sm:$0xff] %v709_v9 }
 0x2e2   : > { %758 = vst [vmem:[#allocation10 + $0x168] sm:$0xff] %v710_v11  ;;  %v571_v11 = vld [vmem:[#allocation10 + $0x70] sm:$0xff] }
 0x2e3   : > { %759 = vst [vmem:[#allocation10 + $0x170] sm:$0xff] %v711_v12 }
 0x2e4   : > { %760 = vst [vmem:[#allocation10 + $0x178] sm:$0xff] %v712_v41  ;;  %v648_v42 = vpop.permute.xlu1 %647  ;;  %v572_v41 = vld [vmem:[#allocation10 + $0x78] sm:$0xff] }
 0x2e5   : > { %v681_v48 = vsub.f32 %v573_v43, %v648_v42  ;;  %v682_v50 = vsub.f32 %v574_v45, %v648_v42  ;;  %v683_v51 = vsub.f32 %v575_v27, %v648_v42  ;;  %v684_v36 = vsub.f32 %v576_v29, %v648_v42  ;;  %v638_v52 = vpop.permute.xlu0 %637 }
 0x2e6   : > { %v685_v38 = vsub.f32 %v577_v46, %v648_v42  ;;  %v686_v56 = vsub.f32 %v578_v44, %v648_v42  ;;  %v687_v62 = vsub.f32 %v579_v53, %v648_v42  ;;  %v688_v1 = vsub.f32 %v580_v55, %v648_v42 }
 0x2e7   : > { %729 = vst [vmem:[#allocation10 + $0x80] sm:$0xff] %v681_v48  ;;  %v665_v14 = vsub.f32 %v557_v58, %v638_v52  ;;  %v666_v18 = vsub.f32 %v558_v54, %v638_v52  ;;  %v667_v20 = vsub.f32 %v559_v6, %v638_v52  ;;  %v668_v47 = vsub.f32 %v560_v10, %v638_v52 }
 0x2e8   : > { %730 = vst [vmem:[#allocation10 + $0x88] sm:$0xff] %v682_v50  ;;  %v669_v22 = vsub.f32 %v561_v17, %v638_v52  ;;  %v670_v23 = vsub.f32 %v562_v19, %v638_v52  ;;  %v671_v26 = vsub.f32 %v563_v21, %v638_v52  ;;  %v672_v0 = vsub.f32 %v564_v49, %v638_v52 }
 0x2e9   : > { %731 = vst [vmem:[#allocation10 + $0x90] sm:$0xff] %v683_v51 }
 0x2ea   : > { %732 = vst [vmem:[#allocation10 + $0x98] sm:$0xff] %v684_v36 }
 0x2eb   : > { %733 = vst [vmem:[#allocation10 + $0xa0] sm:$0xff] %v685_v38 }
 0x2ec   : > { %734 = vst [vmem:[#allocation10 + $0xa8] sm:$0xff] %v686_v56  ;;  %v653_v24 = vpop.permute.xlu1 %652 }
 0x2ed   : > { %735 = vst [vmem:[#allocation10 + $0xb0] sm:$0xff] %v687_v62  ;;  %v689_v30 = vsub.f32 %v581_v25, %v653_v24  ;;  %v690_v57 = vsub.f32 %v582_v61, %v653_v24  ;;  %v691_v60 = vsub.f32 %v583_v2, %v653_v24  ;;  %v692_v3 = vsub.f32 %v584_v28, %v653_v24  ;;  %v643_v8 = vpop.permute.xlu0 %642 }
 0x2ee   : > { %736 = vst [vmem:[#allocation10 + $0xb8] sm:$0xff] %v688_v1  ;;  %v693_v5 = vsub.f32 %v585_v31, %v653_v24  ;;  %v694_v7 = vsub.f32 %v586_v59, %v653_v24  ;;  %v695_v32 = vsub.f32 %v587_v63, %v653_v24  ;;  %v696_v13 = vsub.f32 %v588_v4, %v653_v24 }
 0x2ef   : > { %713 = vst [vmem:[#allocation10] sm:$0xff] %v665_v14  ;;  %v673_v35 = vsub.f32 %v565_v33, %v643_v8  ;;  %v674_v39 = vsub.f32 %v566_v34, %v643_v8  ;;  %v675_v9 = vsub.f32 %v567_v15, %v643_v8  ;;  %v676_v12 = vsub.f32 %v568_v16, %v643_v8 }
 0x2f0   : > { %714 = vst [vmem:[#allocation10 + $0x8] sm:$0xff] %v666_v18  ;;  %v677_v43 = vsub.f32 %v569_v37, %v643_v8  ;;  %v678_v45 = vsub.f32 %v570_v40, %v643_v8  ;;  %v679_v27 = vsub.f32 %v571_v11, %v643_v8  ;;  %v680_v29 = vsub.f32 %v572_v41, %v643_v8 }
 0x2f1   : > { %715 = vst [vmem:[#allocation10 + $0x10] sm:$0xff] %v667_v20 }
 0x2f2   : > { %716 = vst [vmem:[#allocation10 + $0x18] sm:$0xff] %v668_v47 }
 0x2f3   : > { %717 = vst [vmem:[#allocation10 + $0x20] sm:$0xff] %v669_v22 }
 0x2f4   : > { %718 = vst [vmem:[#allocation10 + $0x28] sm:$0xff] %v670_v23 }
 0x2f5   : > { %719 = vst [vmem:[#allocation10 + $0x30] sm:$0xff] %v671_v26 }
 0x2f6   : > { %720 = vst [vmem:[#allocation10 + $0x38] sm:$0xff] %v672_v0 }
 0x2f7   : > { %737 = vst [vmem:[#allocation10 + $0xc0] sm:$0xff] %v689_v30 }
 0x2f8   : > { %738 = vst [vmem:[#allocation10 + $0xc8] sm:$0xff] %v690_v57 }
 0x2f9   : > { %739 = vst [vmem:[#allocation10 + $0xd0] sm:$0xff] %v691_v60 }
 0x2fa   : > { %740 = vst [vmem:[#allocation10 + $0xd8] sm:$0xff] %v692_v3 }
 0x2fb   : > { %741 = vst [vmem:[#allocation10 + $0xe0] sm:$0xff] %v693_v5 }
 0x2fc   : > { %742 = vst [vmem:[#allocation10 + $0xe8] sm:$0xff] %v694_v7 }
 0x2fd   : > { %743 = vst [vmem:[#allocation10 + $0xf0] sm:$0xff] %v695_v32 }
 0x2fe   : > { %744 = vst [vmem:[#allocation10 + $0xf8] sm:$0xff] %v696_v13 }
 0x2ff   : > { %721 = vst [vmem:[#allocation10 + $0x40] sm:$0xff] %v673_v35 }
 0x300   : > { %722 = vst [vmem:[#allocation10 + $0x48] sm:$0xff] %v674_v39 }
 0x301   : > { %723 = vst [vmem:[#allocation10 + $0x50] sm:$0xff] %v675_v9 }
 0x302   : > { %724 = vst [vmem:[#allocation10 + $0x58] sm:$0xff] %v676_v12 }
 0x303   : > { %725 = vst [vmem:[#allocation10 + $0x60] sm:$0xff] %v677_v43 }
 0x304   : > { %726 = vst [vmem:[#allocation10 + $0x68] sm:$0xff] %v678_v45 }
 0x305   : > { %727 = vst [vmem:[#allocation10 + $0x70] sm:$0xff] %v679_v27 }
 0x306   : > { %728 = vst [vmem:[#allocation10 + $0x78] sm:$0xff] %v680_v29 }
 0x307 PF: > { %p961_p7 = scmp.eq.s32.totalorder %s1319_s22, 3  ;;  %s1234_s10 = smov [#allocation10]  }
 0x308   : > { %s766_s11 = sshll.u32 %s1234_s10, 4  ;;  %s768_s20 = sshll.u32 %s1575_s3, 4  ;;  %s767_s11 = int_to_ptr.vmem [resolvable:$true] %s766_s11  ;;  %s769_s20 = int_to_ptr.hbm [resolvable:$true] %s768_s20 }
 0x309   : > { %s1235_s25 = smov 1024   ;;  %s1236_s15 = smov 64  }
 0x30a   : > { %944 = dma.vmem_to_hbm [thread:$0]  (%p961_p7), %s767_s11, 6144, %s769_s20, [#allocation6], %s1235_s25, %s1235_s25, %s1236_s15  }
 0x30b   : > { %1205 = dma.done.wait (%p961_p7), [#allocation6], 6144  }
 0x30c   : > { %1207 = vsyncadd (%p961_p7), [#allocation6], 4294961152 }
 0x30d PF: > { %p15_p1 = scmp.ge.s32.totalorder %s1278_s16, 6   ;;  %s1579_s12 = smov %s1214_s13 }
 0x30e   : > { %s1580_s13 = smov %s1218_s14  ;;  %s1581_s14 = smov %s1288_s19 }
 0x30f   : > { %s1582_s15 = smov %s1278_s16  ;;  %17 = sbr.rel (!%p15_p1) target bundleno = 5 (0x5), region = 94 }
 0x314   :  { %785 = vsyncpa [#allocation5], 1 }
 0x315   :  { %787 = vsyncpa [#allocation5 + $0x1], 1 }
 0x316   :  { %788 = vsyncpa [#allocation8], 1 }
 0x317   :  { %790 = vsyncpa [#allocation8 + $0x1], 1 }
 0x318   :  { %791 = vsyncpa [#allocation6], 1 }
 0x319   :  { %793 = vsyncpa [#allocation6 + $0x1], 1 }

</bundles_post_ra>
